<compile_context>
chip_gen: v6e
topology: v6e:2x2x1
jax: 0.10.0
libtpu: 0.0.40
codegen_flags: <defaults>
</compile_context>

<pallas_src>
import itertools
from collections import Counter

import numpy as np
import jax
import jax.numpy as jnp
from jax.experimental import pallas as pl
from jax.experimental.pallas import tpu as pltpu


def _dfs_terms(dim: int, order: int):
    """Term tuples in DFS pre-order == Python sorted() order of the Counter keys."""
    terms = []

    def rec(prefix, start_d):
        terms.append(tuple(prefix))
        if len(prefix) == order:
            return
        for d in range(start_d, dim):
            prefix.append(d)
            rec(prefix, d)
            prefix.pop()

    rec([], 0)

    # Sanity check against the module's sorted(Counter(...)) ordering.
    ref = sorted(Counter(
        tuple(sorted(t))
        for o in range(order + 1)
        for t in itertools.product(range(dim), repeat=o)))
    assert terms == ref, "DFS order must match sorted(indc)"
    return terms


def _make_kernel(dim: int, order: int, nterms: int):
    def kernel(x_ref, o_ref):
        # x_ref: (dim, tb, 128), o_ref: (nterms, tb, 128); tb multiple of 8.
        tile_shape = o_ref.shape[1:]
        next_term = [0]

        def emit(val):
            o_ref[next_term[0]] = val          # dense (tb, 128) store per term
            next_term[0] += 1

        def dfs(prefix_val, start_d, depth):
            emit(jnp.ones(tile_shape, o_ref.dtype)
                 if prefix_val is None else prefix_val)
            if depth == order:
                return
            for d in range(start_d, dim):
                xd = x_ref[d]                  # (tb, 128) plane of variable d
                child = xd if prefix_val is None else prefix_val * xd
                dfs(child, d, depth + 1)

        dfs(None, 0, 0)
        assert next_term[0] == nterms

    return kernel


def _round_up(a: int, b: int) -> int:
    return ((a + b - 1) // b) * b


def total_degree(x: jax.Array, dim: int, order: int, *,
                 row_tile: int = 8192,
                 vmem_budget_bytes: int = 8 << 20) -> jax.Array:
    """Pallas implementation of TotalDegree.forward."""
    assert x.shape[-1] == dim
    terms = _dfs_terms(dim, order)
    nterms = len(terms)

    lead_shape = x.shape[:-1]
    n = int(np.prod(lead_shape)) if lead_shape else 1

    # Lane-dense transposed layout: (dim, n), rows on the trailing axes.
    x2 = x.astype(jnp.float32).reshape(n, dim).T

    # Row tile: multiple of 1024 so (tn//128, 128) is (8,128)-aligned; capped by
    # a conservative double-buffered-f32 VMEM budget (safe on all generations)
    # and so that larger inputs still get >= 2 grid steps (v7x megacore).
    granule = 1024
    max_tn = vmem_budget_bytes // (4 * (dim + nterms) * 2)
    max_tn = max(granule, (max_tn // granule) * granule)
    tn = min(_round_up(row_tile, granule), max_tn)
    tn = min(tn, max(granule, _round_up(pl.cdiv(n, 2), granule)))

    n_padded = _round_up(n, tn)
    if n_padded != n:
        # Padded zero columns are computed (cheap) and sliced off below.
        x2 = jnp.pad(x2, ((0, 0), (0, n_padded - n)))

    nb = n_padded // 128
    tb = tn // 128
    x3 = x2.reshape(dim, nb, 128)              # row-major reshape, no data move

    kernel = _make_kernel(dim, order, nterms)

    compiler_kwargs = dict(dimension_semantics=("parallel",))
    if vmem_budget_bytes > (16 << 20):
        # Raise the scoped-VMEM limit only if the budget exceeds the smallest
        # per-chip default (16 MiB on v5e); keep within v7x's 64 MiB physical.
        compiler_kwargs["vmem_limit_bytes"] = int(min(vmem_budget_bytes, 24 << 20))

    out = pl.pallas_call(
        kernel,
        out_shape=jax.ShapeDtypeStruct((nterms, nb, 128), jnp.float32),
        grid_spec=pltpu.PrefetchScalarGridSpec(
            num_scalar_prefetch=0,
            grid=(n_padded // tn,),
            in_specs=[pl.BlockSpec((dim, tb, 128), lambda i: (0, i, 0))],
            out_specs=pl.BlockSpec((nterms, tb, 128), lambda i: (0, i, 0)),
        ),
        compiler_params=pltpu.CompilerParams(**compiler_kwargs),
    )(x3)

    out = out.reshape(nterms, n_padded)[:, :n].T   # (n, nterms)
    return out.reshape(*lead_shape, nterms)


def total_degree_ref(x: jax.Array, dim: int, order: int) -> jax.Array:
    """Pure-JAX reference matching the PyTorch forward exactly."""
    terms = _dfs_terms(dim, order)
    cols = []
    for ind in terms:
        val = jnp.ones(x.shape[:-1], dtype=jnp.float32)
        for d in range(dim):
            val = val * (x[..., d].astype(jnp.float32) ** ind.count(d))
        cols.append(val[..., None])
    return jnp.concatenate(cols, axis=-1)


if __name__ == "__main__":
    dim, order = 4, 2            # nterms = C(dim+order, order) = 15
    batch, seq = 2, 16           # x shape (2, 16, 4)

    key = jax.random.PRNGKey(0)
    x = jax.random.normal(key, (batch, seq, dim), dtype=jnp.float32)

    out = jax.block_until_ready(total_degree(x, dim, order))

    ref = total_degree_ref(x, dim, order)
    np.testing.assert_allclose(np.asarray(out), np.asarray(ref),
                               rtol=1e-5, atol=1e-5)
    assert out.shape == (batch, seq, len(_dfs_terms(dim, order)))

    print("KERNEL_OK")
</pallas_src>

<mosaic_0001>
module attributes {stable_mosaic.version = 11 : i64} {
  func.func @kernel(%arg0: i32, %arg1: memref<4x8x128xf32, #tpu.memory_space<vmem>>, %arg2: memref<15x8x128xf32, #tpu.memory_space<vmem>>) attributes {dimension_semantics = [#tpu.dimension_semantics<parallel>], iteration_bounds = array<i64: 1>, scalar_prefetch = 0 : i64, scratch_operands = 0 : i64, tpu.core_type = #tpu.core_type<tc>, window_params = [{transform_indices = @transform_0, window_bounds = array<i64: 4, 8, 128>}, {transform_indices = @transform_1, window_bounds = array<i64: 15, 8, 128>}]} {
    %cst = arith.constant 1.000000e+00 : f32
    %0 = vector.broadcast %cst : f32 to vector<8x128xf32>
    %c0 = arith.constant 0 : index
    %c0_0 = arith.constant 0 : index
    %c0_1 = arith.constant 0 : index
    %1 = vector.load %arg2[%c0, %c0_0, %c0_1] : memref<15x8x128xf32, #tpu.memory_space<vmem>>, vector<1x8x128xf32>
    %2 = vector.shape_cast %1 : vector<1x8x128xf32> to vector<8x128xf32>
    %3 = vector.shape_cast %0 : vector<8x128xf32> to vector<1x8x128xf32>
    tpu.vector_store %arg2[%c0, %c0_0, %c0_1], %3 {strides = array<i32>} : memref<15x8x128xf32, #tpu.memory_space<vmem>>, vector<1x8x128xf32>,
    %c0_2 = arith.constant 0 : index
    %c0_3 = arith.constant 0 : index
    %c0_4 = arith.constant 0 : index
    %4 = vector.load %arg1[%c0_2, %c0_3, %c0_4] : memref<4x8x128xf32, #tpu.memory_space<vmem>>, vector<1x8x128xf32>
    %5 = vector.shape_cast %4 : vector<1x8x128xf32> to vector<8x128xf32>
    %c1 = arith.constant 1 : index
    %c0_5 = arith.constant 0 : index
    %c0_6 = arith.constant 0 : index
    %6 = vector.load %arg2[%c1, %c0_5, %c0_6] : memref<15x8x128xf32, #tpu.memory_space<vmem>>, vector<1x8x128xf32>
    %7 = vector.shape_cast %6 : vector<1x8x128xf32> to vector<8x128xf32>
    %8 = vector.shape_cast %5 : vector<8x128xf32> to vector<1x8x128xf32>
    tpu.vector_store %arg2[%c1, %c0_5, %c0_6], %8 {strides = array<i32>} : memref<15x8x128xf32, #tpu.memory_space<vmem>>, vector<1x8x128xf32>,
    %c0_7 = arith.constant 0 : index
    %c0_8 = arith.constant 0 : index
    %c0_9 = arith.constant 0 : index
    %9 = vector.load %arg1[%c0_7, %c0_8, %c0_9] : memref<4x8x128xf32, #tpu.memory_space<vmem>>, vector<1x8x128xf32>
    %10 = vector.shape_cast %9 : vector<1x8x128xf32> to vector<8x128xf32>
    %11 = arith.mulf %5, %10 : vector<8x128xf32>
    %c2 = arith.constant 2 : index
    %c0_10 = arith.constant 0 : index
    %c0_11 = arith.constant 0 : index
    %12 = vector.load %arg2[%c2, %c0_10, %c0_11] : memref<15x8x128xf32, #tpu.memory_space<vmem>>, vector<1x8x128xf32>
    %13 = vector.shape_cast %12 : vector<1x8x128xf32> to vector<8x128xf32>
    %14 = vector.shape_cast %11 : vector<8x128xf32> to vector<1x8x128xf32>
    tpu.vector_store %arg2[%c2, %c0_10, %c0_11], %14 {strides = array<i32>} : memref<15x8x128xf32, #tpu.memory_space<vmem>>, vector<1x8x128xf32>,
    %c1_12 = arith.constant 1 : index
    %c0_13 = arith.constant 0 : index
    %c0_14 = arith.constant 0 : index
    %15 = vector.load %arg1[%c1_12, %c0_13, %c0_14] : memref<4x8x128xf32, #tpu.memory_space<vmem>>, vector<1x8x128xf32>
    %16 = vector.shape_cast %15 : vector<1x8x128xf32> to vector<8x128xf32>
    %17 = arith.mulf %5, %16 : vector<8x128xf32>
    %c3 = arith.constant 3 : index
    %c0_15 = arith.constant 0 : index
    %c0_16 = arith.constant 0 : index
    %18 = vector.load %arg2[%c3, %c0_15, %c0_16] : memref<15x8x128xf32, #tpu.memory_space<vmem>>, vector<1x8x128xf32>
    %19 = vector.shape_cast %18 : vector<1x8x128xf32> to vector<8x128xf32>
    %20 = vector.shape_cast %17 : vector<8x128xf32> to vector<1x8x128xf32>
    tpu.vector_store %arg2[%c3, %c0_15, %c0_16], %20 {strides = array<i32>} : memref<15x8x128xf32, #tpu.memory_space<vmem>>, vector<1x8x128xf32>,
    %c2_17 = arith.constant 2 : index
    %c0_18 = arith.constant 0 : index
    %c0_19 = arith.constant 0 : index
    %21 = vector.load %arg1[%c2_17, %c0_18, %c0_19] : memref<4x8x128xf32, #tpu.memory_space<vmem>>, vector<1x8x128xf32>
    %22 = vector.shape_cast %21 : vector<1x8x128xf32> to vector<8x128xf32>
    %23 = arith.mulf %5, %22 : vector<8x128xf32>
    %c4 = arith.constant 4 : index
    %c0_20 = arith.constant 0 : index
    %c0_21 = arith.constant 0 : index
    %24 = vector.load %arg2[%c4, %c0_20, %c0_21] : memref<15x8x128xf32, #tpu.memory_space<vmem>>, vector<1x8x128xf32>
    %25 = vector.shape_cast %24 : vector<1x8x128xf32> to vector<8x128xf32>
    %26 = vector.shape_cast %23 : vector<8x128xf32> to vector<1x8x128xf32>
    tpu.vector_store %arg2[%c4, %c0_20, %c0_21], %26 {strides = array<i32>} : memref<15x8x128xf32, #tpu.memory_space<vmem>>, vector<1x8x128xf32>,
    %c3_22 = arith.constant 3 : index
    %c0_23 = arith.constant 0 : index
    %c0_24 = arith.constant 0 : index
    %27 = vector.load %arg1[%c3_22, %c0_23, %c0_24] : memref<4x8x128xf32, #tpu.memory_space<vmem>>, vector<1x8x128xf32>
    %28 = vector.shape_cast %27 : vector<1x8x128xf32> to vector<8x128xf32>
    %29 = arith.mulf %5, %28 : vector<8x128xf32>
    %c5 = arith.constant 5 : index
    %c0_25 = arith.constant 0 : index
    %c0_26 = arith.constant 0 : index
    %30 = vector.load %arg2[%c5, %c0_25, %c0_26] : memref<15x8x128xf32, #tpu.memory_space<vmem>>, vector<1x8x128xf32>
    %31 = vector.shape_cast %30 : vector<1x8x128xf32> to vector<8x128xf32>
    %32 = vector.shape_cast %29 : vector<8x128xf32> to vector<1x8x128xf32>
    tpu.vector_store %arg2[%c5, %c0_25, %c0_26], %32 {strides = array<i32>} : memref<15x8x128xf32, #tpu.memory_space<vmem>>, vector<1x8x128xf32>,
    %c1_27 = arith.constant 1 : index
    %c0_28 = arith.constant 0 : index
    %c0_29 = arith.constant 0 : index
    %33 = vector.load %arg1[%c1_27, %c0_28, %c0_29] : memref<4x8x128xf32, #tpu.memory_space<vmem>>, vector<1x8x128xf32>
    %34 = vector.shape_cast %33 : vector<1x8x128xf32> to vector<8x128xf32>
    %c6 = arith.constant 6 : index
    %c0_30 = arith.constant 0 : index
    %c0_31 = arith.constant 0 : index
    %35 = vector.load %arg2[%c6, %c0_30, %c0_31] : memref<15x8x128xf32, #tpu.memory_space<vmem>>, vector<1x8x128xf32>
    %36 = vector.shape_cast %35 : vector<1x8x128xf32> to vector<8x128xf32>
    %37 = vector.shape_cast %34 : vector<8x128xf32> to vector<1x8x128xf32>
    tpu.vector_store %arg2[%c6, %c0_30, %c0_31], %37 {strides = array<i32>} : memref<15x8x128xf32, #tpu.memory_space<vmem>>, vector<1x8x128xf32>,
    %c1_32 = arith.constant 1 : index
    %c0_33 = arith.constant 0 : index
    %c0_34 = arith.constant 0 : index
    %38 = vector.load %arg1[%c1_32, %c0_33, %c0_34] : memref<4x8x128xf32, #tpu.memory_space<vmem>>, vector<1x8x128xf32>
    %39 = vector.shape_cast %38 : vector<1x8x128xf32> to vector<8x128xf32>
    %40 = arith.mulf %34, %39 : vector<8x128xf32>
    %c7 = arith.constant 7 : index
    %c0_35 = arith.constant 0 : index
    %c0_36 = arith.constant 0 : index
    %41 = vector.load %arg2[%c7, %c0_35, %c0_36] : memref<15x8x128xf32, #tpu.memory_space<vmem>>, vector<1x8x128xf32>
    %42 = vector.shape_cast %41 : vector<1x8x128xf32> to vector<8x128xf32>
    %43 = vector.shape_cast %40 : vector<8x128xf32> to vector<1x8x128xf32>
    tpu.vector_store %arg2[%c7, %c0_35, %c0_36], %43 {strides = array<i32>} : memref<15x8x128xf32, #tpu.memory_space<vmem>>, vector<1x8x128xf32>,
    %c2_37 = arith.constant 2 : index
    %c0_38 = arith.constant 0 : index
    %c0_39 = arith.constant 0 : index
    %44 = vector.load %arg1[%c2_37, %c0_38, %c0_39] : memref<4x8x128xf32, #tpu.memory_space<vmem>>, vector<1x8x128xf32>
    %45 = vector.shape_cast %44 : vector<1x8x128xf32> to vector<8x128xf32>
    %46 = arith.mulf %34, %45 : vector<8x128xf32>
    %c8 = arith.constant 8 : index
    %c0_40 = arith.constant 0 : index
    %c0_41 = arith.constant 0 : index
    %47 = vector.load %arg2[%c8, %c0_40, %c0_41] : memref<15x8x128xf32, #tpu.memory_space<vmem>>, vector<1x8x128xf32>
    %48 = vector.shape_cast %47 : vector<1x8x128xf32> to vector<8x128xf32>
    %49 = vector.shape_cast %46 : vector<8x128xf32> to vector<1x8x128xf32>
    tpu.vector_store %arg2[%c8, %c0_40, %c0_41], %49 {strides = array<i32>} : memref<15x8x128xf32, #tpu.memory_space<vmem>>, vector<1x8x128xf32>,
    %c3_42 = arith.constant 3 : index
    %c0_43 = arith.constant 0 : index
    %c0_44 = arith.constant 0 : index
    %50 = vector.load %arg1[%c3_42, %c0_43, %c0_44] : memref<4x8x128xf32, #tpu.memory_space<vmem>>, vector<1x8x128xf32>
    %51 = vector.shape_cast %50 : vector<1x8x128xf32> to vector<8x128xf32>
    %52 = arith.mulf %34, %51 : vector<8x128xf32>
    %c9 = arith.constant 9 : index
    %c0_45 = arith.constant 0 : index
    %c0_46 = arith.constant 0 : index
    %53 = vector.load %arg2[%c9, %c0_45, %c0_46] : memref<15x8x128xf32, #tpu.memory_space<vmem>>, vector<1x8x128xf32>
    %54 = vector.shape_cast %53 : vector<1x8x128xf32> to vector<8x128xf32>
    %55 = vector.shape_cast %52 : vector<8x128xf32> to vector<1x8x128xf32>
    tpu.vector_store %arg2[%c9, %c0_45, %c0_46], %55 {strides = array<i32>} : memref<15x8x128xf32, #tpu.memory_space<vmem>>, vector<1x8x128xf32>,
    %c2_47 = arith.constant 2 : index
    %c0_48 = arith.constant 0 : index
    %c0_49 = arith.constant 0 : index
    %56 = vector.load %arg1[%c2_47, %c0_48, %c0_49] : memref<4x8x128xf32, #tpu.memory_space<vmem>>, vector<1x8x128xf32>
    %57 = vector.shape_cast %56 : vector<1x8x128xf32> to vector<8x128xf32>
    %c10 = arith.constant 10 : index
    %c0_50 = arith.constant 0 : index
    %c0_51 = arith.constant 0 : index
    %58 = vector.load %arg2[%c10, %c0_50, %c0_51] : memref<15x8x128xf32, #tpu.memory_space<vmem>>, vector<1x8x128xf32>
    %59 = vector.shape_cast %58 : vector<1x8x128xf32> to vector<8x128xf32>
    %60 = vector.shape_cast %57 : vector<8x128xf32> to vector<1x8x128xf32>
    tpu.vector_store %arg2[%c10, %c0_50, %c0_51], %60 {strides = array<i32>} : memref<15x8x128xf32, #tpu.memory_space<vmem>>, vector<1x8x128xf32>,
    %c2_52 = arith.constant 2 : index
    %c0_53 = arith.constant 0 : index
    %c0_54 = arith.constant 0 : index
    %61 = vector.load %arg1[%c2_52, %c0_53, %c0_54] : memref<4x8x128xf32, #tpu.memory_space<vmem>>, vector<1x8x128xf32>
    %62 = vector.shape_cast %61 : vector<1x8x128xf32> to vector<8x128xf32>
    %63 = arith.mulf %57, %62 : vector<8x128xf32>
    %c11 = arith.constant 11 : index
    %c0_55 = arith.constant 0 : index
    %c0_56 = arith.constant 0 : index
    %64 = vector.load %arg2[%c11, %c0_55, %c0_56] : memref<15x8x128xf32, #tpu.memory_space<vmem>>, vector<1x8x128xf32>
    %65 = vector.shape_cast %64 : vector<1x8x128xf32> to vector<8x128xf32>
    %66 = vector.shape_cast %63 : vector<8x128xf32> to vector<1x8x128xf32>
    tpu.vector_store %arg2[%c11, %c0_55, %c0_56], %66 {strides = array<i32>} : memref<15x8x128xf32, #tpu.memory_space<vmem>>, vector<1x8x128xf32>,
    %c3_57 = arith.constant 3 : index
    %c0_58 = arith.constant 0 : index
    %c0_59 = arith.constant 0 : index
    %67 = vector.load %arg1[%c3_57, %c0_58, %c0_59] : memref<4x8x128xf32, #tpu.memory_space<vmem>>, vector<1x8x128xf32>
    %68 = vector.shape_cast %67 : vector<1x8x128xf32> to vector<8x128xf32>
    %69 = arith.mulf %57, %68 : vector<8x128xf32>
    %c12 = arith.constant 12 : index
    %c0_60 = arith.constant 0 : index
    %c0_61 = arith.constant 0 : index
    %70 = vector.load %arg2[%c12, %c0_60, %c0_61] : memref<15x8x128xf32, #tpu.memory_space<vmem>>, vector<1x8x128xf32>
    %71 = vector.shape_cast %70 : vector<1x8x128xf32> to vector<8x128xf32>
    %72 = vector.shape_cast %69 : vector<8x128xf32> to vector<1x8x128xf32>
    tpu.vector_store %arg2[%c12, %c0_60, %c0_61], %72 {strides = array<i32>} : memref<15x8x128xf32, #tpu.memory_space<vmem>>, vector<1x8x128xf32>,
    %c3_62 = arith.constant 3 : index
    %c0_63 = arith.constant 0 : index
    %c0_64 = arith.constant 0 : index
    %73 = vector.load %arg1[%c3_62, %c0_63, %c0_64] : memref<4x8x128xf32, #tpu.memory_space<vmem>>, vector<1x8x128xf32>
    %74 = vector.shape_cast %73 : vector<1x8x128xf32> to vector<8x128xf32>
    %c13 = arith.constant 13 : index
    %c0_65 = arith.constant 0 : index
    %c0_66 = arith.constant 0 : index
    %75 = vector.load %arg2[%c13, %c0_65, %c0_66] : memref<15x8x128xf32, #tpu.memory_space<vmem>>, vector<1x8x128xf32>
    %76 = vector.shape_cast %75 : vector<1x8x128xf32> to vector<8x128xf32>
    %77 = vector.shape_cast %74 : vector<8x128xf32> to vector<1x8x128xf32>
    tpu.vector_store %arg2[%c13, %c0_65, %c0_66], %77 {strides = array<i32>} : memref<15x8x128xf32, #tpu.memory_space<vmem>>, vector<1x8x128xf32>,
    %c3_67 = arith.constant 3 : index
    %c0_68 = arith.constant 0 : index
    %c0_69 = arith.constant 0 : index
    %78 = vector.load %arg1[%c3_67, %c0_68, %c0_69] : memref<4x8x128xf32, #tpu.memory_space<vmem>>, vector<1x8x128xf32>
    %79 = vector.shape_cast %78 : vector<1x8x128xf32> to vector<8x128xf32>
    %80 = arith.mulf %74, %79 : vector<8x128xf32>
    %c14 = arith.constant 14 : index
    %c0_70 = arith.constant 0 : index
    %c0_71 = arith.constant 0 : index
    %81 = vector.load %arg2[%c14, %c0_70, %c0_71] : memref<15x8x128xf32, #tpu.memory_space<vmem>>, vector<1x8x128xf32>
    %82 = vector.shape_cast %81 : vector<1x8x128xf32> to vector<8x128xf32>
    %83 = vector.shape_cast %80 : vector<8x128xf32> to vector<1x8x128xf32>
    tpu.vector_store %arg2[%c14, %c0_70, %c0_71], %83 {strides = array<i32>} : memref<15x8x128xf32, #tpu.memory_space<vmem>>, vector<1x8x128xf32>,
    return
  }
  func.func @transform_0(%arg0: i32) -> (i32, i32, i32) {
    %c0_i32 = arith.constant 0 : i32
    %c0_i32_0 = arith.constant 0 : i32
    %c0_i32_1 = arith.constant 0 : i32
    return %c0_i32, %arg0, %c0_i32_0 : i32, i32, i32
  }
  func.func @transform_1(%arg0: i32) -> (i32, i32, i32) {
    %c0_i32 = arith.constant 0 : i32
    %c0_i32_0 = arith.constant 0 : i32
    %c0_i32_1 = arith.constant 0 : i32
    return %c0_i32, %arg0, %c0_i32_0 : i32, i32, i32
  }
}

</mosaic_0001>

<bundles_post_ra>
// kernel: tpu_custom_call.1
= control target key start
LH: loop header
LB: loop body
LE: loop exit
PB: predicated region body
PF: predicated region fallthrough
CT: control target
= control target key end

     0   :  { %6 = vsyncpa [#allocation3], 0  ;;  %s172_s0 = inlined_call_operand.hbm [shape: f32[4,8,128], index: 0, kind: input, shape index: {}]   ;;  %s173_s1 = inlined_call_operand.hbm [shape: f32[15,8,128], index: 1, kind: output, shape index: {}]  }
   0x1   :  { %7 = vsyncpa [#allocation4], 0  ;;  %s145_s6 = smov [#allocation2]  }
   0x2   :  { %s13_s7 = sshll.u32 %s145_s6, 4  ;;  %s14_s7 = int_to_ptr.vmem [resolvable:$true] %s13_s7 }
   0x3   :  { %s109_s8 = scalar_lea.vmem %s14_s7, 512  ;;  %p114_p1 = scmp.lt.s32.totalorder %s14_s7, %s14_s7 }
   0x4   :  { %p110_p0 = scmp.ne.s32.totalorder %s14_s7, %s109_s8  ;;  %p115_p2 = scmp.lt.s32.totalorder %s109_s8, %s109_s8 }
   0x6   :  { %p116_p3 = por %p115_p2, %p114_p1 }
   0x8   :  { %p117_p4 = pnand %p116_p3, %p110_p0 }
   0xa   :  { %120 = shalt.err (!%p117_p4)
}
   0xb   :  { %s146_s9 = smov 128   ;;  %s147_s10 = smov 8  }
   0xc   :  { %19 = dma.hbm_to_vmem [thread:$0]  %s172_s0, 512, %s14_s7, [#allocation3], %s146_s9, %s146_s9, %s147_s10  }
   0xd   :  { %141 = dma.done.wait [#allocation3], 512  }
   0xe   :  { %142 = vsyncadd [#allocation3], 4294966784  ;;  %v148_v0 = vmov 1.0   ;;  %v24_v1 = vld [vmem:[#allocation2] sm:$0xff]  ;;  %v32_v2 = vld [vmem:[#allocation2 + $0x8] sm:$0xff]  ;;  %s149_s13 = smov [#allocation5]  }
   0xf   :  { %23 = vst [vmem:[#allocation5] sm:$0xff] %v148_v0  ;;  %v37_v3 = vld [vmem:[#allocation2 + $0x10] sm:$0xff]  ;;  %s84_s14 = sshll.u32 %s149_s13, 4  ;;  %26 = vst [vmem:[#allocation5 + $0x8] sm:$0xff] %v24_v1  ;;  %v28_v4 = vmul.f32 %v24_v1, %v24_v1  ;;  %v33_v5 = vmul.f32 %v32_v2, %v24_v1  ;;  %v42_v7 = vld [vmem:[#allocation2 + $0x18] sm:$0xff]  ;;  %v50_v8 = vmul.f32 %v32_v2, %v32_v2  ;;  %s85_s14 = int_to_ptr.vmem [resolvable:$true] %s84_s14 }
  0x10   :  { %v38_v6 = vmul.f32 %v37_v3, %v24_v1  ;;  %48 = vst [vmem:[#allocation5 + $0x30] sm:$0xff] %v32_v2  ;;  %63 = vst [vmem:[#allocation5 + $0x50] sm:$0xff] %v37_v3  ;;  %v43_v9 = vmul.f32 %v42_v7, %v24_v1  ;;  %v54_v10 = vmul.f32 %v37_v3, %v32_v2  ;;  %s121_s0 = scalar_lea.vmem %s85_s14, 1920  ;;  %p126_p6 = scmp.lt.s32.totalorder %s85_s14, %s85_s14 }
  0x11   :  { %v58_v11 = vmul.f32 %v42_v7, %v32_v2  ;;  %v65_v12 = vmul.f32 %v37_v3, %v37_v3  ;;  %74 = vst [vmem:[#allocation5 + $0x68] sm:$0xff] %v42_v7  ;;  %30 = vst [vmem:[#allocation5 + $0x10] sm:$0xff] %v28_v4  ;;  %v69_v13 = vmul.f32 %v42_v7, %v37_v3  ;;  %p122_p5 = scmp.ne.s32.totalorder %s85_s14, %s121_s0  ;;  %p127_p7 = scmp.lt.s32.totalorder %s121_s0, %s121_s0 }
  0x12   :  { %35 = vst [vmem:[#allocation5 + $0x18] sm:$0xff] %v33_v5  ;;  %40 = vst [vmem:[#allocation5 + $0x20] sm:$0xff] %v38_v6  ;;  %v76_v14 = vmul.f32 %v42_v7, %v42_v7 }
  0x13   :  { %52 = vst [vmem:[#allocation5 + $0x38] sm:$0xff] %v50_v8  ;;  %45 = vst [vmem:[#allocation5 + $0x28] sm:$0xff] %v43_v9  ;;  %p128_p8 = por %p127_p7, %p126_p6 }
  0x14   :  { %56 = vst [vmem:[#allocation5 + $0x40] sm:$0xff] %v54_v10  ;;  %60 = vst [vmem:[#allocation5 + $0x48] sm:$0xff] %v58_v11 }
  0x15   :  { %67 = vst [vmem:[#allocation5 + $0x58] sm:$0xff] %v65_v12  ;;  %71 = vst [vmem:[#allocation5 + $0x60] sm:$0xff] %v69_v13  ;;  %p129_p9 = pnand %p128_p8, %p122_p5 }
  0x16   :  { %78 = vst [vmem:[#allocation5 + $0x70] sm:$0xff] %v76_v14 }
  0x17   :  { %132 = shalt.err (!%p129_p9)
}
  0x18   :  { %90 = dma.vmem_to_hbm [thread:$0]  %s85_s14, 1920, %s173_s1, [#allocation4], %s146_s9, %s146_s9, %s147_s10  }
  0x19   :  { %143 = dma.done.wait [#allocation4], 1920  }
  0x1a   :  { %144 = vsyncadd [#allocation4], 4294965376 }
  0x1b   :  { %94 = vsyncpa [#allocation3], 1 }
  0x1c   :  { %95 = vsyncpa [#allocation4], 1 }

</bundles_post_ra>
